<compile_context>
chip_gen: v5e
topology: v5e:2x2
jax: 0.10.0
libtpu: 0.0.40
codegen_flags: <defaults>
</compile_context>

<pallas_src>
import functools

import jax
import jax.numpy as jnp
from jax.experimental import pallas as pl
from jax.experimental.pallas import tpu as pltpu


def hmn_kernel(ut_ref, h_ref, us_ref, ue_ref,
               wdh_ref, wdus_ref, wdue_ref,
               w1u_ref, w1r_ref, b1_ref,
               w2_ref, b2_ref,
               w3a_ref, w3b_ref, b3_ref,
               out_ref, *, hidden_dim, pool):
    """One batch tile, feature-major (batch along lanes).

    ut_ref  : (2H, Bm)  u_t
    h_ref   : (H,  Bm)  h_i
    us_ref  : (2H, Bm)  u_si_m_1
    ue_ref  : (2H, Bm)  u_ei_m_1
    wdh/wdus/wdue : (H,H)/(H,2H)/(H,2H)  column-split of W_D
    w1u/w1r : (P*H,2H)/(P*H,H)           column-split of W_1.reshape(P*H, 3H)
    b1      : (P*H, 1)
    w2      : (P*H, H),  b2 : (P*H, 1)
    w3a/w3b : (P, H)/(P, H)              column-split of W_3.reshape(P, 2H)
    b3      : (P, 1)
    out_ref : (1, Bm)   lane-dense output row
    """
    H, P = hidden_dim, pool
    f32 = jnp.float32
    cdt = w2_ref.dtype                      # MXU-input dtype (bf16 or f32)

    # r = tanh(W_D @ [h ; u_s ; u_e])  -> (H, Bm); f32 accumulate, f32 tanh.
    r = jnp.tanh(
        jnp.dot(wdh_ref[...], h_ref[...], preferred_element_type=f32)
        + jnp.dot(wdus_ref[...], us_ref[...], preferred_element_type=f32)
        + jnp.dot(wdue_ref[...], ue_ref[...], preferred_element_type=f32))
    # TODO(synk): dropout_r / dropout_mt1 / dropout_mt2 are eval-mode
    # (nn.Identity) no-ops and are omitted.

    # maxout layer 1: (P*H, Bm) -> max over pool -> (H, Bm).
    m1_bm = (jnp.dot(w1u_ref[...], ut_ref[...], preferred_element_type=f32)
             + jnp.dot(w1r_ref[...], r.astype(cdt), preferred_element_type=f32)
             + b1_ref[...])
    m1 = m1_bm[0:H, :]
    for p in range(1, P):                   # sublane-aligned slices: pure VPU
        m1 = jnp.maximum(m1, m1_bm[p * H:(p + 1) * H, :])

    # maxout layer 2.
    m2_bm = (jnp.dot(w2_ref[...], m1.astype(cdt), preferred_element_type=f32)
             + b2_ref[...])
    m2 = m2_bm[0:H, :]
    for p in range(1, P):
        m2 = jnp.maximum(m2, m2_bm[p * H:(p + 1) * H, :])

    # output maxout: (P, Bm) -> max over pool -> (1, Bm), lane-dense store.
    o_bm = (jnp.dot(w3a_ref[...], m1.astype(cdt), preferred_element_type=f32)
            + jnp.dot(w3b_ref[...], m2.astype(cdt), preferred_element_type=f32)
            + b3_ref[...])
    out_ref[...] = jnp.max(o_bm, axis=0, keepdims=True)


def _round_up(x, m):
    return (x + m - 1) // m * m


def highway_maxout_network(u_t, h_i, u_si_m_1, u_ei_m_1, params, *,
                           hidden_dim, maxout_pool_size,
                           block_b=512, compute_dtype=jnp.bfloat16):
    """Wrapper: layout glue (transpose/split/cast) in JAX, hot path in Pallas."""
    H, P = hidden_dim, maxout_pool_size
    B = u_t.shape[0]
    W_D, W_1, b_1, W_2, b_2, W_3, b_3 = params

    # ---- layout glue only (no compute): feature-major, batch along lanes ----
    def fmajor(x):                          # (B, F, 1) -> (F, B)
        return x[..., 0].T.astype(compute_dtype)

    ut_t, h_t, us_t, ue_t = map(fmajor, (u_t, h_i, u_si_m_1, u_ei_m_1))

    # Batch (lane) tile: multiple of 128; pad batch up to a whole number of tiles.
    Bm = min(_round_up(block_b, 128), _round_up(B, 128))
    B_pad = _round_up(B, Bm)
    if B_pad != B:
        padfn = lambda x: jnp.pad(x, ((0, 0), (0, B_pad - B)))
        ut_t, h_t, us_t, ue_t = map(padfn, (ut_t, h_t, us_t, ue_t))

    # Pre-split / reshape weights so there is no concatenate anywhere.
    wd = W_D.astype(compute_dtype)                         # (H, 5H)
    wdh, wdus, wdue = wd[:, :H], wd[:, H:3 * H], wd[:, 3 * H:]
    w1 = W_1.reshape(P * H, 3 * H).astype(compute_dtype)
    w1u, w1r = w1[:, :2 * H], w1[:, 2 * H:]
    b1 = b_1.reshape(P * H, 1).astype(jnp.float32)
    w2 = W_2.reshape(P * H, H).astype(compute_dtype)
    b2 = b_2.reshape(P * H, 1).astype(jnp.float32)
    w3 = W_3.reshape(P, 2 * H).astype(compute_dtype)
    w3a, w3b = w3[:, :H], w3[:, H:]
    b3 = b_3.reshape(P, 1).astype(jnp.float32)

    kernel = functools.partial(hmn_kernel, hidden_dim=H, pool=P)

    act = lambda f: pl.BlockSpec((f, Bm), lambda i: (0, i))   # batch-tiled
    res = lambda a: pl.BlockSpec(a.shape, lambda i: (0, 0))   # VMEM-resident

    out = pl.pallas_call(
        kernel,
        out_shape=jax.ShapeDtypeStruct((1, B_pad), jnp.float32),
        grid=(B_pad // Bm,),
        in_specs=[act(2 * H), act(H), act(2 * H), act(2 * H),
                  res(wdh), res(wdus), res(wdue),
                  res(w1u), res(w1r), res(b1),
                  res(w2), res(b2),
                  res(w3a), res(w3b), res(b3)],
        out_specs=pl.BlockSpec((1, Bm), lambda i: (0, i)),
        compiler_params=pltpu.CompilerParams(
            dimension_semantics=("parallel",)),
    )(ut_t, h_t, us_t, ue_t, wdh, wdus, wdue, w1u, w1r, b1, w2, b2,
      w3a, w3b, b3)

    return out[0, :B][:, None]              # (B, 1), matching PyTorch output


def ref_forward(u_t, h_i, u_si, u_ei, params, *, hidden_dim, maxout_pool_size):
    """Pure-JAX (f32) transcription of the PyTorch forward, for verification."""
    H, P = hidden_dim, maxout_pool_size
    W_D, W_1, b_1, W_2, b_2, W_3, b_3 = params
    B = u_t.shape[0]
    hue = jnp.concatenate([h_i, u_si, u_ei], axis=1)                 # (B,5H,1)
    r = jnp.tanh(jnp.einsum('ij,bjk->bik', W_D, hue))                # (B,H,1)
    u_r = jnp.concatenate([u_t, r], axis=1)[..., 0].T                # (3H,B)
    m1bm = (W_1.reshape(P * H, 3 * H) @ u_r).T.reshape(B, P, H) + b_1[None]
    m1 = m1bm.max(axis=1)
    m2bm = (W_2.reshape(P * H, H) @ m1.T).T.reshape(B, P, H) + b_2[None]
    m2 = m2bm.max(axis=1)
    obm = (W_3.reshape(P, 2 * H) @ jnp.concatenate([m1, m2], 1).T
           ).T.reshape(B, P, 1) + b_3[None]
    return obm.max(axis=1)                                           # (B,1)


def _max_err_ok(out, ref, rel, abs_):
    err = float(jnp.max(jnp.abs(out - ref)))
    scale = float(jnp.max(jnp.abs(ref)))
    return err <= rel * scale + abs_


def _make_inputs(key, B, H):
    ks = jax.random.split(key, 4)
    u_t = jax.random.normal(ks[0], (B, 2 * H, 1), jnp.float32)
    h_i = jax.random.normal(ks[1], (B, H, 1), jnp.float32)
    u_si = jax.random.normal(ks[2], (B, 2 * H, 1), jnp.float32)
    u_ei = jax.random.normal(ks[3], (B, 2 * H, 1), jnp.float32)
    return u_t, h_i, u_si, u_ei


if __name__ == "__main__":
    H, P = 32, 4  # hidden_dim, maxout_pool_size
    key = jax.random.PRNGKey(0)
    kp, k_in_small, k_in_big = jax.random.split(key, 3)

    # deterministic parameters (shapes from __init__, th.randn equivalent)
    ks = jax.random.split(kp, 7)
    W_D = jax.random.normal(ks[0], (H, 5 * H), jnp.float32)
    W_1 = jax.random.normal(ks[1], (P, H, 3 * H), jnp.float32)
    b_1 = jax.random.normal(ks[2], (P, H), jnp.float32)
    W_2 = jax.random.normal(ks[3], (P, H, H), jnp.float32)
    b_2 = jax.random.normal(ks[4], (P, H), jnp.float32)
    W_3 = jax.random.normal(ks[5], (P, 1, 2 * H), jnp.float32)
    b_3 = jax.random.normal(ks[6], (P, 1), jnp.float32)
    params = (W_D, W_1, b_1, W_2, b_2, W_3, b_3)

    # --- small-batch check (B=2): f32 compute (tight) + bf16 compute (loose) ---
    B = 2
    u_t, h_i, u_si, u_ei = _make_inputs(k_in_small, B, H)
    ref = ref_forward(u_t, h_i, u_si, u_ei, params,
                      hidden_dim=H, maxout_pool_size=P)

    out_f32 = jax.block_until_ready(
        highway_maxout_network(u_t, h_i, u_si, u_ei, params,
                               hidden_dim=H, maxout_pool_size=P,
                               compute_dtype=jnp.float32))
    assert out_f32.shape == (B, 1), out_f32.shape
    assert _max_err_ok(out_f32, ref, rel=1e-3, abs_=1e-2), (out_f32, ref)

    out_bf16 = jax.block_until_ready(
        highway_maxout_network(u_t, h_i, u_si, u_ei, params,
                               hidden_dim=H, maxout_pool_size=P,
                               compute_dtype=jnp.bfloat16))
    assert out_bf16.shape == (B, 1), out_bf16.shape
    assert _max_err_ok(out_bf16, ref, rel=5e-2, abs_=2.0), (out_bf16, ref)

    # --- multi-tile check (B=600, Bm=256 -> grid of 3, with batch padding) ---
    B2 = 600
    u_t2, h_i2, u_si2, u_ei2 = _make_inputs(k_in_big, B2, H)
    ref2 = ref_forward(u_t2, h_i2, u_si2, u_ei2, params,
                       hidden_dim=H, maxout_pool_size=P)
    out2 = jax.block_until_ready(
        highway_maxout_network(u_t2, h_i2, u_si2, u_ei2, params,
                               hidden_dim=H, maxout_pool_size=P,
                               block_b=256, compute_dtype=jnp.bfloat16))
    assert out2.shape == (B2, 1), out2.shape
    assert _max_err_ok(out2, ref2, rel=5e-2, abs_=2.0), "multi-tile mismatch"

    print("KERNEL_OK")
</pallas_src>

<mosaic_0001>
module attributes {stable_mosaic.version = 11 : i64} {
  func.func @hmn_kernel(%arg0: i32, %arg1: memref<64x128xf32, #tpu.memory_space<vmem>>, %arg2: memref<32x128xf32, #tpu.memory_space<vmem>>, %arg3: memref<64x128xf32, #tpu.memory_space<vmem>>, %arg4: memref<64x128xf32, #tpu.memory_space<vmem>>, %arg5: memref<32x32xf32, #tpu.memory_space<vmem>>, %arg6: memref<32x64xf32, #tpu.memory_space<vmem>>, %arg7: memref<32x64xf32, #tpu.memory_space<vmem>>, %arg8: memref<128x64xf32, #tpu.memory_space<vmem>>, %arg9: memref<128x32xf32, #tpu.memory_space<vmem>>, %arg10: memref<128x1xf32, #tpu.memory_space<vmem>>, %arg11: memref<128x32xf32, #tpu.memory_space<vmem>>, %arg12: memref<128x1xf32, #tpu.memory_space<vmem>>, %arg13: memref<4x32xf32, #tpu.memory_space<vmem>>, %arg14: memref<4x32xf32, #tpu.memory_space<vmem>>, %arg15: memref<4x1xf32, #tpu.memory_space<vmem>>, %arg16: memref<1x128xf32, #tpu.memory_space<vmem>>) attributes {dimension_semantics = [#tpu.dimension_semantics<parallel>], iteration_bounds = array<i64: 1>, scalar_prefetch = 0 : i64, scratch_operands = 0 : i64, tpu.core_type = #tpu.core_type<tc>, window_params = [{transform_indices = @transform_0, window_bounds = array<i64: 64, 128>}, {transform_indices = @transform_1, window_bounds = array<i64: 32, 128>}, {transform_indices = @transform_2, window_bounds = array<i64: 64, 128>}, {transform_indices = @transform_3, window_bounds = array<i64: 64, 128>}, {pipeline_mode = #tpu.pipeline_mode<synchronous>, transform_indices = @transform_4, window_bounds = array<i64: 32, 32>}, {pipeline_mode = #tpu.pipeline_mode<synchronous>, transform_indices = @transform_5, window_bounds = array<i64: 32, 64>}, {pipeline_mode = #tpu.pipeline_mode<synchronous>, transform_indices = @transform_6, window_bounds = array<i64: 32, 64>}, {pipeline_mode = #tpu.pipeline_mode<synchronous>, transform_indices = @transform_7, window_bounds = array<i64: 128, 64>}, {pipeline_mode = #tpu.pipeline_mode<synchronous>, transform_indices = @transform_8, window_bounds = array<i64: 128, 32>}, {pipeline_mode = #tpu.pipeline_mode<synchronous>, transform_indices = @transform_9, window_bounds = array<i64: 128, 1>}, {pipeline_mode = #tpu.pipeline_mode<synchronous>, transform_indices = @transform_10, window_bounds = array<i64: 128, 32>}, {pipeline_mode = #tpu.pipeline_mode<synchronous>, transform_indices = @transform_11, window_bounds = array<i64: 128, 1>}, {pipeline_mode = #tpu.pipeline_mode<synchronous>, transform_indices = @transform_12, window_bounds = array<i64: 4, 32>}, {pipeline_mode = #tpu.pipeline_mode<synchronous>, transform_indices = @transform_13, window_bounds = array<i64: 4, 32>}, {pipeline_mode = #tpu.pipeline_mode<synchronous>, transform_indices = @transform_14, window_bounds = array<i64: 4, 1>}, {transform_indices = @transform_15, window_bounds = array<i64: 1, 128>}]} {
    %c0 = arith.constant 0 : index
    %c0_0 = arith.constant 0 : index
    %0 = vector.load %arg5[%c0, %c0_0] : memref<32x32xf32, #tpu.memory_space<vmem>>, vector<32x32xf32>
    %c0_1 = arith.constant 0 : index
    %c0_2 = arith.constant 0 : index
    %1 = vector.load %arg2[%c0_1, %c0_2] : memref<32x128xf32, #tpu.memory_space<vmem>>, vector<32x128xf32>
    %cst = arith.constant dense<0.000000e+00> : vector<32x128xf32>
    %2 = tpu.matmul %0, %1, %cst {dimension_numbers = #tpu.dot_dimension_numbers<[1], [0], [0], [1], [0, 0, 1, 1], [], []>} : vector<32x32xf32>, vector<32x128xf32>, vector<32x128xf32> -> vector<32x128xf32>
    %c0_3 = arith.constant 0 : index
    %c0_4 = arith.constant 0 : index
    %3 = vector.load %arg6[%c0_3, %c0_4] : memref<32x64xf32, #tpu.memory_space<vmem>>, vector<32x64xf32>
    %c0_5 = arith.constant 0 : index
    %c0_6 = arith.constant 0 : index
    %4 = vector.load %arg3[%c0_5, %c0_6] : memref<64x128xf32, #tpu.memory_space<vmem>>, vector<64x128xf32>
    %cst_7 = arith.constant dense<0.000000e+00> : vector<32x128xf32>
    %5 = tpu.matmul %3, %4, %cst_7 {dimension_numbers = #tpu.dot_dimension_numbers<[1], [0], [0], [1], [0, 0, 1, 1], [], []>} : vector<32x64xf32>, vector<64x128xf32>, vector<32x128xf32> -> vector<32x128xf32>
    %6 = arith.addf %2, %5 : vector<32x128xf32>
    %c0_8 = arith.constant 0 : index
    %c0_9 = arith.constant 0 : index
    %7 = vector.load %arg7[%c0_8, %c0_9] : memref<32x64xf32, #tpu.memory_space<vmem>>, vector<32x64xf32>
    %c0_10 = arith.constant 0 : index
    %c0_11 = arith.constant 0 : index
    %8 = vector.load %arg4[%c0_10, %c0_11] : memref<64x128xf32, #tpu.memory_space<vmem>>, vector<64x128xf32>
    %cst_12 = arith.constant dense<0.000000e+00> : vector<32x128xf32>
    %9 = tpu.matmul %7, %8, %cst_12 {dimension_numbers = #tpu.dot_dimension_numbers<[1], [0], [0], [1], [0, 0, 1, 1], [], []>} : vector<32x64xf32>, vector<64x128xf32>, vector<32x128xf32> -> vector<32x128xf32>
    %10 = arith.addf %6, %9 : vector<32x128xf32>
    %11 = math.tanh %10 : vector<32x128xf32>
    %c0_13 = arith.constant 0 : index
    %c0_14 = arith.constant 0 : index
    %12 = vector.load %arg8[%c0_13, %c0_14] : memref<128x64xf32, #tpu.memory_space<vmem>>, vector<128x64xf32>
    %c0_15 = arith.constant 0 : index
    %c0_16 = arith.constant 0 : index
    %13 = vector.load %arg1[%c0_15, %c0_16] : memref<64x128xf32, #tpu.memory_space<vmem>>, vector<64x128xf32>
    %cst_17 = arith.constant dense<0.000000e+00> : vector<128x128xf32>
    %14 = tpu.matmul %12, %13, %cst_17 {dimension_numbers = #tpu.dot_dimension_numbers<[1], [0], [0], [1], [0, 0, 1, 1], [], []>} : vector<128x64xf32>, vector<64x128xf32>, vector<128x128xf32> -> vector<128x128xf32>
    %c0_18 = arith.constant 0 : index
    %c0_19 = arith.constant 0 : index
    %15 = vector.load %arg9[%c0_18, %c0_19] : memref<128x32xf32, #tpu.memory_space<vmem>>, vector<128x32xf32>
    %cst_20 = arith.constant dense<0.000000e+00> : vector<128x128xf32>
    %16 = tpu.matmul %15, %11, %cst_20 {dimension_numbers = #tpu.dot_dimension_numbers<[1], [0], [0], [1], [0, 0, 1, 1], [], []>} : vector<128x32xf32>, vector<32x128xf32>, vector<128x128xf32> -> vector<128x128xf32>
    %17 = arith.addf %14, %16 : vector<128x128xf32>
    %c0_21 = arith.constant 0 : index
    %c0_22 = arith.constant 0 : index
    %18 = vector.load %arg10[%c0_21, %c0_22] : memref<128x1xf32, #tpu.memory_space<vmem>>, vector<128x1xf32>
    %19 = vector.broadcast %18 : vector<128x1xf32> to vector<128x128xf32>
    %20 = arith.addf %17, %19 : vector<128x128xf32>
    %21 = vector.extract_strided_slice %20 {offsets = [0, 0], sizes = [32, 128], strides = [1, 1]} : vector<128x128xf32> to vector<32x128xf32>
    %22 = vector.extract_strided_slice %20 {offsets = [32, 0], sizes = [32, 128], strides = [1, 1]} : vector<128x128xf32> to vector<32x128xf32>
    %23 = arith.maximumf %21, %22 : vector<32x128xf32>
    %24 = vector.extract_strided_slice %20 {offsets = [64, 0], sizes = [32, 128], strides = [1, 1]} : vector<128x128xf32> to vector<32x128xf32>
    %25 = arith.maximumf %23, %24 : vector<32x128xf32>
    %26 = vector.extract_strided_slice %20 {offsets = [96, 0], sizes = [32, 128], strides = [1, 1]} : vector<128x128xf32> to vector<32x128xf32>
    %27 = arith.maximumf %25, %26 : vector<32x128xf32>
    %c0_23 = arith.constant 0 : index
    %c0_24 = arith.constant 0 : index
    %28 = vector.load %arg11[%c0_23, %c0_24] : memref<128x32xf32, #tpu.memory_space<vmem>>, vector<128x32xf32>
    %cst_25 = arith.constant dense<0.000000e+00> : vector<128x128xf32>
    %29 = tpu.matmul %28, %27, %cst_25 {dimension_numbers = #tpu.dot_dimension_numbers<[1], [0], [0], [1], [0, 0, 1, 1], [], []>} : vector<128x32xf32>, vector<32x128xf32>, vector<128x128xf32> -> vector<128x128xf32>
    %c0_26 = arith.constant 0 : index
    %c0_27 = arith.constant 0 : index
    %30 = vector.load %arg12[%c0_26, %c0_27] : memref<128x1xf32, #tpu.memory_space<vmem>>, vector<128x1xf32>
    %31 = vector.broadcast %30 : vector<128x1xf32> to vector<128x128xf32>
    %32 = arith.addf %29, %31 : vector<128x128xf32>
    %33 = vector.extract_strided_slice %32 {offsets = [0, 0], sizes = [32, 128], strides = [1, 1]} : vector<128x128xf32> to vector<32x128xf32>
    %34 = vector.extract_strided_slice %32 {offsets = [32, 0], sizes = [32, 128], strides = [1, 1]} : vector<128x128xf32> to vector<32x128xf32>
    %35 = arith.maximumf %33, %34 : vector<32x128xf32>
    %36 = vector.extract_strided_slice %32 {offsets = [64, 0], sizes = [32, 128], strides = [1, 1]} : vector<128x128xf32> to vector<32x128xf32>
    %37 = arith.maximumf %35, %36 : vector<32x128xf32>
    %38 = vector.extract_strided_slice %32 {offsets = [96, 0], sizes = [32, 128], strides = [1, 1]} : vector<128x128xf32> to vector<32x128xf32>
    %39 = arith.maximumf %37, %38 : vector<32x128xf32>
    %c0_28 = arith.constant 0 : index
    %c0_29 = arith.constant 0 : index
    %40 = vector.load %arg13[%c0_28, %c0_29] : memref<4x32xf32, #tpu.memory_space<vmem>>, vector<4x32xf32>
    %cst_30 = arith.constant dense<0.000000e+00> : vector<4x128xf32>
    %41 = tpu.matmul %40, %27, %cst_30 {dimension_numbers = #tpu.dot_dimension_numbers<[1], [0], [0], [1], [0, 0, 1, 1], [], []>} : vector<4x32xf32>, vector<32x128xf32>, vector<4x128xf32> -> vector<4x128xf32>
    %c0_31 = arith.constant 0 : index
    %c0_32 = arith.constant 0 : index
    %42 = vector.load %arg14[%c0_31, %c0_32] : memref<4x32xf32, #tpu.memory_space<vmem>>, vector<4x32xf32>
    %cst_33 = arith.constant dense<0.000000e+00> : vector<4x128xf32>
    %43 = tpu.matmul %42, %39, %cst_33 {dimension_numbers = #tpu.dot_dimension_numbers<[1], [0], [0], [1], [0, 0, 1, 1], [], []>} : vector<4x32xf32>, vector<32x128xf32>, vector<4x128xf32> -> vector<4x128xf32>
    %44 = arith.addf %41, %43 : vector<4x128xf32>
    %c0_34 = arith.constant 0 : index
    %c0_35 = arith.constant 0 : index
    %45 = vector.load %arg15[%c0_34, %c0_35] : memref<4x1xf32, #tpu.memory_space<vmem>>, vector<4x1xf32>
    %46 = vector.broadcast %45 : vector<4x1xf32> to vector<4x128xf32>
    %47 = arith.addf %44, %46 : vector<4x128xf32>
    %cst_36 = arith.constant dense<0xFF800000> : vector<128xf32>
    %48 = vector.multi_reduction <maximumf>, %47, %cst_36 [0] : vector<4x128xf32> to vector<128xf32>
    %49 = vector.shape_cast %48 : vector<128xf32> to vector<1x128xf32>
    %c0_37 = arith.constant 0 : index
    %c0_38 = arith.constant 0 : index
    %50 = vector.load %arg16[%c0_37, %c0_38] : memref<1x128xf32, #tpu.memory_space<vmem>>, vector<1x128xf32>
    tpu.vector_store %arg16[%c0_37, %c0_38], %49 {strides = array<i32>} : memref<1x128xf32, #tpu.memory_space<vmem>>, vector<1x128xf32>,
    return
  }
  func.func @transform_0(%arg0: i32) -> (i32, i32) {
    %c0_i32 = arith.constant 0 : i32
    %c0_i32_0 = arith.constant 0 : i32
    return %c0_i32, %arg0 : i32, i32
  }
  func.func @transform_1(%arg0: i32) -> (i32, i32) {
    %c0_i32 = arith.constant 0 : i32
    %c0_i32_0 = arith.constant 0 : i32
    return %c0_i32, %arg0 : i32, i32
  }
  func.func @transform_2(%arg0: i32) -> (i32, i32) {
    %c0_i32 = arith.constant 0 : i32
    %c0_i32_0 = arith.constant 0 : i32
    return %c0_i32, %arg0 : i32, i32
  }
  func.func @transform_3(%arg0: i32) -> (i32, i32) {
    %c0_i32 = arith.constant 0 : i32
    %c0_i32_0 = arith.constant 0 : i32
    return %c0_i32, %arg0 : i32, i32
  }
  func.func @transform_4(%arg0: i32) -> (i32, i32) {
    %c0_i32 = arith.constant 0 : i32
    %c0_i32_0 = arith.constant 0 : i32
    %c0_i32_1 = arith.constant 0 : i32
    return %c0_i32, %c0_i32_0 : i32, i32
  }
  func.func @transform_5(%arg0: i32) -> (i32, i32) {
    %c0_i32 = arith.constant 0 : i32
    %c0_i32_0 = arith.constant 0 : i32
    %c0_i32_1 = arith.constant 0 : i32
    return %c0_i32, %c0_i32_0 : i32, i32
  }
  func.func @transform_6(%arg0: i32) -> (i32, i32) {
    %c0_i32 = arith.constant 0 : i32
    %c0_i32_0 = arith.constant 0 : i32
    %c0_i32_1 = arith.constant 0 : i32
    return %c0_i32, %c0_i32_0 : i32, i32
  }
  func.func @transform_7(%arg0: i32) -> (i32, i32) {
    %c0_i32 = arith.constant 0 : i32
    %c0_i32_0 = arith.constant 0 : i32
    %c0_i32_1 = arith.constant 0 : i32
    return %c0_i32, %c0_i32_0 : i32, i32
  }
  func.func @transform_8(%arg0: i32) -> (i32, i32) {
    %c0_i32 = arith.constant 0 : i32
    %c0_i32_0 = arith.constant 0 : i32
    %c0_i32_1 = arith.constant 0 : i32
    return %c0_i32, %c0_i32_0 : i32, i32
  }
  func.func @transform_9(%arg0: i32) -> (i32, i32) {
    %c0_i32 = arith.constant 0 : i32
    %c0_i32_0 = arith.constant 0 : i32
    %c0_i32_1 = arith.constant 0 : i32
    return %c0_i32, %c0_i32_0 : i32, i32
  }
  func.func @transform_10(%arg0: i32) -> (i32, i32) {
    %c0_i32 = arith.constant 0 : i32
    %c0_i32_0 = arith.constant 0 : i32
    %c0_i32_1 = arith.constant 0 : i32
    return %c0_i32, %c0_i32_0 : i32, i32
  }
  func.func @transform_11(%arg0: i32) -> (i32, i32) {
    %c0_i32 = arith.constant 0 : i32
    %c0_i32_0 = arith.constant 0 : i32
    %c0_i32_1 = arith.constant 0 : i32
    return %c0_i32, %c0_i32_0 : i32, i32
  }
  func.func @transform_12(%arg0: i32) -> (i32, i32) {
    %c0_i32 = arith.constant 0 : i32
    %c0_i32_0 = arith.constant 0 : i32
    %c0_i32_1 = arith.constant 0 : i32
    return %c0_i32, %c0_i32_0 : i32, i32
  }
  func.func @transform_13(%arg0: i32) -> (i32, i32) {
    %c0_i32 = arith.constant 0 : i32
    %c0_i32_0 = arith.constant 0 : i32
    %c0_i32_1 = arith.constant 0 : i32
    return %c0_i32, %c0_i32_0 : i32, i32
  }
  func.func @transform_14(%arg0: i32) -> (i32, i32) {
    %c0_i32 = arith.constant 0 : i32
    %c0_i32_0 = arith.constant 0 : i32
    %c0_i32_1 = arith.constant 0 : i32
    return %c0_i32, %c0_i32_0 : i32, i32
  }
  func.func @transform_15(%arg0: i32) -> (i32, i32) {
    %c0_i32 = arith.constant 0 : i32
    %c0_i32_0 = arith.constant 0 : i32
    return %c0_i32, %arg0 : i32, i32
  }
}

</mosaic_0001>

<bundles_post_ra>
// kernel: tpu_custom_call.1
= control target key start
LH: loop header
LB: loop body
LE: loop exit
PB: predicated region body
PF: predicated region fallthrough
CT: control target
= control target key end

     0   :  { %vm113_vm0 = vcmask 261120   ;;  %s1573_s0 = inlined_call_operand.vmem [shape: f32[64,128], index: 0, kind: input, shape index: {}]   ;;  %s1574_s1 = inlined_call_operand.vmem [shape: f32[32,128], index: 1, kind: input, shape index: {}]   ;;  %s1575_s2 = inlined_call_operand.vmem [shape: f32[64,128], index: 2, kind: input, shape index: {}]   ;;  %s1576_s3 = inlined_call_operand.vmem [shape: f32[64,128], index: 3, kind: input, shape index: {}]   ;;  %s1577_s4 = inlined_call_operand.vmem [shape: f32[32,32], index: 4, kind: input, shape index: {}]   ;;  %s1578_s5 = inlined_call_operand.vmem [shape: f32[32,64], index: 5, kind: input, shape index: {}]   ;;  %s1579_s6 = inlined_call_operand.vmem [shape: f32[32,64], index: 6, kind: input, shape index: {}]   ;;  %s1580_s7 = inlined_call_operand.vmem [shape: f32[128,64], index: 7, kind: input, shape index: {}]   ;;  %s1581_s8 = inlined_call_operand.vmem [shape: f32[128,32], index: 8, kind: input, shape index: {}]   ;;  %s1582_s9 = inlined_call_operand.vmem [shape: f32[128,1], index: 9, kind: input, shape index: {}]   ;;  %s1583_s10 = inlined_call_operand.vmem [shape: f32[128,32], index: 10, kind: input, shape index: {}]   ;;  %s1584_s11 = inlined_call_operand.vmem [shape: f32[128,1], index: 11, kind: input, shape index: {}]   ;;  %s1585_s12 = inlined_call_operand.vmem [shape: f32[4,32], index: 12, kind: input, shape index: {}]   ;;  %s1586_s13 = inlined_call_operand.vmem [shape: f32[4,32], index: 13, kind: input, shape index: {}]   ;;  %s1587_s14 = inlined_call_operand.vmem [shape: f32[4,1], index: 14, kind: input, shape index: {}]   ;;  %s1588_s15 = inlined_call_operand.hbm [shape: f32[1,128], index: 15, kind: output, shape index: {}]  }
   0x1   :  { %v70_v0 = vld [vmem:[%s1575_s2 + $0x38] sm:$0xff]  ;;  %v69_v1 = vld [vmem:[%s1575_s2 + $0x30] sm:$0xff]  ;;  %v68_v2 = vld [vmem:[%s1575_s2 + $0x28] sm:$0xff] }
   0x2   :  { %92 = vmatpush.msra.mxu2 %v70_v0  ;;  %v58_v3 = vld [vmem:[%s1574_s1 + $0x18] sm:$0xff]  ;;  %v57_v4 = vld [vmem:[%s1574_s1 + $0x10] sm:$0xff]  ;;  %v67_v5 = vld [vmem:[%s1575_s2 + $0x20] sm:$0xff] }
   0x3   :  { %138 = vmatpush.msra.mxu1 %v58_v3  ;;  %v56_v6 = vld [vmem:[%s1574_s1 + $0x8] sm:$0xff]  ;;  %v66_v7 = vld [vmem:[%s1575_s2 + $0x18] sm:$0xff]  ;;  %v55_v8 = vld [vmem:[%s1574_s1] sm:$0xff] }
   0x4   :  { %93 = vmatpush.msra.mxu2 %v69_v1  ;;  %v51_v9 = vld [vmem:[%s1577_s4] sm:$0xff] }
   0x5   :  { %139 = vmatpush.msra.mxu1 %v57_v4 }
   0x6   :  { %94 = vmatpush.msra.mxu2 %v68_v2 }
   0x7   :  { %140 = vmatpush.msra.mxu1 %v56_v6 }
   0x8   :  { %95 = vmatpush.msra.mxu2 %v67_v5 }
   0x9   :  { %20 = vsyncpa [#allocation3], 0  ;;  %v65_v10 = vld [vmem:[%s1575_s2 + $0x10] sm:$0xff]  ;;  %141 = vmatpush.msra.mxu1 %v55_v8  ;;  %v64_v11 = vld [vmem:[%s1575_s2 + $0x8] sm:$0xff]  ;;  %vm71_vm1 = vcmask 523264   ;;  %v1032_v42 = vmov 0  }
   0xa   :  { %96 = vmatpush.msra.mxu2 %v66_v7  ;;  %927 = vmatmul.msk.f32.vlgmr.msra.gmra.mxu1 %vm113_vm0, %v51_v9  ;;  %v63_v12 = vld [vmem:[%s1575_s2] sm:$0xff]  ;;  %v166_v14 = vld [vmem:[%s1576_s3 + $0x38] sm:$0xff]  ;;  %v52_v15 = vld [vmem:[%s1577_s4 + $0x8] sm:$0xff]  ;;  %vm898_vm2 = vcmask 1043456  }
   0xb   :  { %v59_v13 = vld [vmem:[%s1578_s5] sm:$0xff]  ;;  %v165_v16 = vld [vmem:[%s1576_s3 + $0x30] sm:$0xff]  ;;  %v164_v17 = vld [vmem:[%s1576_s3 + $0x28] sm:$0xff]  ;;  %995 = vset.pattern.permute.xlu0 %v1032_v42  ;;  %996 = vset.pattern.permute.xlu1 %v1032_v42 }
   0xc   :  { %97 = vmatpush.msra.mxu2 %v65_v10  ;;  %v163_v18 = vld [vmem:[%s1576_s3 + $0x20] sm:$0xff]  ;;  %v60_v19 = vld [vmem:[%s1578_s5 + $0x8] sm:$0xff]  ;;  %v162_v20 = vld [vmem:[%s1576_s3 + $0x18] sm:$0xff]  ;;  %997 = vset.pattern.permute.xlu2 %v1032_v42 }
   0xd   :  { %v53_v21 = vld [vmem:[%s1577_s4 + $0x10] sm:$0xff]  ;;  %v160_v23 = vld [vmem:[%s1576_s3 + $0x8] sm:$0xff]  ;;  %v159_v24 = vld [vmem:[%s1576_s3] sm:$0xff] }
   0xe   :  { %98 = vmatpush.msra.mxu2 %v64_v11  ;;  %v161_v22 = vld [vmem:[%s1576_s3 + $0x10] sm:$0xff]  ;;  %v54_v26 = vld [vmem:[%s1577_s4 + $0x18] sm:$0xff]  ;;  %v155_v28 = vld [vmem:[%s1579_s6] sm:$0xff] }
   0xf   :  { %v61_v25 = vld [vmem:[%s1578_s5 + $0x10] sm:$0xff]  ;;  %v62_v27 = vld [vmem:[%s1578_s5 + $0x18] sm:$0xff]  ;;  %v156_v29 = vld [vmem:[%s1579_s6 + $0x8] sm:$0xff] }
  0x10   :  { %99 = vmatpush.msra.mxu2 %v63_v12  ;;  %v157_v30 = vld [vmem:[%s1579_s6 + $0x10] sm:$0xff]  ;;  %v158_v31 = vld [vmem:[%s1579_s6 + $0x18] sm:$0xff]  ;;  %v237_v43 = vld [vmem:[%s1573_s0 + $0x28] sm:$0xff] }
  0x11   :  { %923 = vmatmul.msk.f32.vlgmr.msra.gmra.mxu2 %vm71_vm1, %v59_v13  ;;  %v239_v37 = vld [vmem:[%s1573_s0 + $0x38] sm:$0xff]  ;;  %v238_v40 = vld [vmem:[%s1573_s0 + $0x30] sm:$0xff]  ;;  %v236_v44 = vld [vmem:[%s1573_s0 + $0x20] sm:$0xff] }
  0x12   :  { %187 = vmatpush.msrb.mxu2 %v166_v14  ;;  %928 = vmatmul.msk.f32.gmra.mxu1 %vm113_vm0, %v52_v15  ;;  %v485_v41 = vld [vmem:[%s1582_s9 + $0x18] sm:$0xff]  ;;  %v234_v47 = vld [vmem:[%s1573_s0 + $0x10] sm:$0xff]  ;;  %v233_v49 = vld [vmem:[%s1573_s0 + $0x8] sm:$0xff] }
  0x13   :  { %425 = vmatpush.msrb.mxu1 %v239_v37  ;;  %515 = vperm.xlu0 %995, %v485_v41   ;;  %v235_v45 = vld [vmem:[%s1573_s0 + $0x18] sm:$0xff]  ;;  %v232_v51 = vld [vmem:[%s1573_s0] sm:$0xff]  ;;  %v487_v54 = vld [vmem:[%s1582_s9 + $0x28] sm:$0xff] }
  0x14   :  { %188 = vmatpush.msrb.mxu2 %v165_v16  ;;  %v489_v48 = vld [vmem:[%s1582_s9 + $0x38] sm:$0xff]  ;;  %v216_v52 = vld [vmem:[%s1580_s7] sm:$0xff]  ;;  %v217_v56 = vld [vmem:[%s1580_s7 + $0x8] sm:$0xff] }
  0x15   :  { %426 = vmatpush.msrb.mxu1 %v238_v40  ;;  %v482_v63 = vld [vmem:[%s1582_s9] sm:$0xff]  ;;  %v218_v2 = vld [vmem:[%s1580_s7 + $0x10] sm:$0xff]  ;;  %v219_v7 = vld [vmem:[%s1580_s7 + $0x18] sm:$0xff] }
  0x16   :  { %189 = vmatpush.msrb.mxu2 %v164_v17  ;;  %v484_v5 = vld [vmem:[%s1582_s9 + $0x10] sm:$0xff]  ;;  %v240_v9 = vld [vmem:[%s1581_s8] sm:$0xff]  ;;  %v241_v13 = vld [vmem:[%s1581_s8 + $0x8] sm:$0xff] }
  0x17   :  { %427 = vmatpush.msrb.mxu1 %v237_v43  ;;  %510 = vperm.xlu1 %996, %v484_v5   ;;  %v488_v11 = vld [vmem:[%s1582_s9 + $0x30] sm:$0xff]  ;;  %v220_v12 = vld [vmem:[%s1580_s7 + $0x20] sm:$0xff]  ;;  %v493_v14 = vld [vmem:[%s1582_s9 + $0x58] sm:$0xff] }
  0x18   :  { %190 = vmatpush.msrb.mxu2 %v163_v18  ;;  %v492_v15 = vld [vmem:[%s1582_s9 + $0x50] sm:$0xff]  ;;  %555 = vperm.xlu2 %997, %v493_v14   ;;  %v221_v16 = vld [vmem:[%s1580_s7 + $0x28] sm:$0xff]  ;;  %v486_v18 = vld [vmem:[%s1582_s9 + $0x20] sm:$0xff] }
  0x19   :  { %924 = vmatmul.msk.f32.gmra.mxu2 %vm71_vm1, %v60_v19  ;;  %428 = vmatpush.msrb.mxu1 %v236_v44  ;;  %v242_v17 = vld [vmem:[%s1581_s8 + $0x10] sm:$0xff]  ;;  %v483_v19 = vld [vmem:[%s1582_s9 + $0x8] sm:$0xff]  ;;  %v637_v41 = vld [vmem:[%s1584_s11 + $0x78] sm:$0xff] }
  0x1a   :  { %191 = vmatpush.msrb.mxu2 %v162_v20  ;;  %929 = vmatmul.msk.f32.gmra.mxu1 %vm113_vm0, %v53_v21  ;;  %v222_v20 = vld [vmem:[%s1580_s7 + $0x30] sm:$0xff]  ;;  %v243_v21 = vld [vmem:[%s1581_s8 + $0x18] sm:$0xff]  ;;  %v622_v42 = vld [vmem:[%s1584_s11] sm:$0xff] }
  0x1b   :  { %429 = vmatpush.msrb.mxu1 %v235_v45  ;;  %535 = vperm.xlu0 %995, %v489_v48   ;;  %v636_v48 = vld [vmem:[%s1584_s11 + $0x70] sm:$0xff] }
  0x1c   :  { %192 = vmatpush.msrb.mxu2 %v161_v22  ;;  %v496_v22 = vld [vmem:[%s1582_s9 + $0x70] sm:$0xff] }
  0x1d   :  { %430 = vmatpush.msrb.mxu1 %v234_v47 }
  0x1e   :  { %193 = vmatpush.msrb.mxu2 %v160_v23  ;;  %v490_v23 = vld [vmem:[%s1582_s9 + $0x40] sm:$0xff] }
  0x1f   :  { %431 = vmatpush.msrb.mxu1 %v233_v49  ;;  %530 = vperm.xlu1 %996, %v488_v11  }
  0x20   :  { %194 = vmatpush.msrb.mxu2 %v159_v24  ;;  %505 = vperm.xlu2 %997, %v483_v19   ;;  %v223_v24 = vld [vmem:[%s1580_s7 + $0x38] sm:$0xff] }
  0x21   :  { %925 = vmatmul.msk.f32.gmra.mxu2 %vm71_vm1, %v61_v25  ;;  %432 = vmatpush.msrb.mxu1 %v232_v51  ;;  %v244_v25 = vld [vmem:[%s1581_s8 + $0x20] sm:$0xff] }
  0x22   :  { %930 = vmatmul.msk.f32.gmra.mxu1 %vm113_vm0, %v54_v26  ;;  %985 = vmatpush.msra.mxu2 %v239_v37  ;;  %v494_v26 = vld [vmem:[%s1582_s9 + $0x60] sm:$0xff]  ;;  %v627_v37 = vld [vmem:[%s1584_s11 + $0x28] sm:$0xff] }
  0x23   :  { %525 = vperm.xlu0 %995, %v487_v54   ;;  %v632_v54 = vld [vmem:[%s1584_s11 + $0x50] sm:$0xff] }
  0x24   :  { %986 = vmatpush.msra.mxu2 %v238_v40  ;;  %v247_v40 = vld [vmem:[%s1581_s8 + $0x38] sm:$0xff] }
  0x26   :  { %987 = vmatpush.msra.mxu2 %v237_v43  ;;  %v629_v43 = vld [vmem:[%s1584_s11 + $0x38] sm:$0xff] }
  0x27   :  { %550 = vperm.xlu1 %996, %v492_v15  }
  0x28   :  { %988 = vmatpush.msra.mxu2 %v236_v44  ;;  %v227_v44 = vld [vmem:[%s1580_s7 + $0x58] sm:$0xff] }
  0x29   :  { %926 = vmatmul.msk.f32.gmra.mxu2 %vm71_vm1, %v62_v27  ;;  %v625_v27 = vld [vmem:[%s1584_s11 + $0x18] sm:$0xff] }
  0x2a   :  { %989 = vmatpush.msra.mxu2 %v235_v45  ;;  %951 = vmatmul.msk.f32.vlgmr.msrb.gmra.mxu1 %vm71_vm1, %v216_v52  ;;  %v248_v45 = vld [vmem:[%s1581_s8 + $0x40] sm:$0xff]  ;;  %v635_v52 = vld [vmem:[%s1584_s11 + $0x68] sm:$0xff] }
  0x2b   :  { %500 = vperm.xlu0 %995, %v482_v63   ;;  %v891_v63 = vld [vmem:[%s1587_s14] sm:$0xf] }
  0x2c   :  { %990 = vmatpush.msra.mxu2 %v234_v47  ;;  %v631_v47 = vld [vmem:[%s1584_s11 + $0x48] sm:$0xff] }
  0x2e   :  { %991 = vmatpush.msra.mxu2 %v233_v49  ;;  %v633_v49 = vld [vmem:[%s1584_s11 + $0x58] sm:$0xff] }
  0x2f   :  { %520 = vperm.xlu1 %996, %v486_v18  }
  0x30   :  { %992 = vmatpush.msra.mxu2 %v232_v51  ;;  %v229_v51 = vld [vmem:[%s1580_s7 + $0x68] sm:$0xff] }
  0x31   :  { %931 = vmatmul.msk.f32.vlgmr.msrb.gmra.mxu2 %vm71_vm1, %v155_v28  ;;  %v497_v28 = vld [vmem:[%s1582_s9 + $0x78] sm:$0xff] }
  0x32   :  { %952 = vmatmul.msk.f32.gmra.mxu1 %vm71_vm1, %v217_v56  ;;  %575 = vperm.xlu2 %997, %v497_v28   ;;  %v230_v56 = vld [vmem:[%s1580_s7 + $0x70] sm:$0xff] }
  0x33   :  { %570 = vperm.xlu0 %995, %v496_v22  }
  0x37   :  { %540 = vperm.xlu1 %996, %v490_v23  }
  0x39   :  { %932 = vmatmul.msk.f32.gmra.mxu2 %vm71_vm1, %v156_v29  ;;  %v224_v29 = vld [vmem:[%s1580_s7 + $0x40] sm:$0xff] }
  0x3a   :  { %953 = vmatmul.msk.f32.gmra.mxu1 %vm71_vm1, %v218_v2 }
  0x3b   :  { %560 = vperm.xlu0 %995, %v494_v26  }
  0x3f   :  { %655 = vperm.xlu1 %996, %v625_v27  }
  0x41   :  { %933 = vmatmul.msk.f32.gmra.mxu2 %vm71_vm1, %v157_v30  ;;  %v245_v30 = vld [vmem:[%s1581_s8 + $0x28] sm:$0xff] }
  0x42   :  { %954 = vmatmul.msk.f32.gmra.mxu1 %vm71_vm1, %v219_v7 }
  0x49   :  { %934 = vmatmul.msk.f32.gmra.mxu2 %vm71_vm1, %v158_v31  ;;  %v624_v31 = vld [vmem:[%s1584_s11 + $0x10] sm:$0xff] }
  0x4a   :  { %955 = vmatmul.msk.f32.gmra.mxu1 %vm71_vm1, %v220_v12  ;;  %650 = vperm.xlu0 %995, %v624_v31  }
  0x52   :  { %956 = vmatmul.msk.f32.gmra.mxu1 %vm71_vm1, %v221_v16 }
  0x5a   :  { %957 = vmatmul.msk.f32.gmra.mxu1 %vm71_vm1, %v222_v20 }
  0x62   :  { %958 = vmatmul.msk.f32.gmra.mxu1 %vm71_vm1, %v223_v24 }
  0x6a   :  { %959 = vmatmul.msk.f32.gmra.mxu1 %vm71_vm1, %v224_v29 }
  0x72   :  { %v556_v20 = vpop.permute.xlu2 %555 }
  0x7a   :  { %v506_v29 = vpop.permute.xlu2 %505 }
  0x85   :  { %v516_v5 = vpop.permute.xlu0 %515 }
  0x87   :  { %v143_v35 = vpop.f32.mrf.mxu1 }
  0x89   :  { %v511_v7 = vpop.permute.xlu1 %510 }
  0x8d   :  { %v536_v11 = vpop.permute.xlu0 %535 }
  0x8f   :  { %v146_v38 = vpop.f32.mrf.mxu1 }
  0x91   :  { %v531_v12 = vpop.permute.xlu1 %530 }
  0x94   :  { %v101_v32 = vpop.f32.mrf.mxu2 }
  0x95   :  { %v144_v0 = vadd.f32 %v143_v35, %v101_v32  ;;  %v628_v32 = vld [vmem:[%s1584_s11 + $0x30] sm:$0xff]  ;;  %v526_v16 = vpop.permute.xlu0 %525 }
  0x96   :  { %670 = vperm.xlu1 %996, %v628_v32   ;;  %v246_v35 = vld [vmem:[%s1581_s8 + $0x30] sm:$0xff] }
  0x97   :  { %v149_v50 = vpop.f32.mrf.mxu1 }
  0x9c   :  { %v104_v33 = vpop.f32.mrf.mxu2 }
  0x9d   :  { %v147_v60 = vadd.f32 %v146_v38, %v104_v33  ;;  %v491_v33 = vld [vmem:[%s1582_s9 + $0x48] sm:$0xff] }
  0x9e   :  { %545 = vperm.xlu2 %997, %v491_v33   ;;  %665 = vperm.xlu1 %996, %v627_v37   ;;  %v495_v38 = vld [vmem:[%s1582_s9 + $0x68] sm:$0xff] }
  0x9f   :  { %v152_v55 = vpop.f32.mrf.mxu1 }
  0xa4   :  { %v107_v34 = vpop.f32.mrf.mxu2 }
  0xa5   :  { %v150_v57 = vadd.f32 %v149_v50, %v107_v34  ;;  %v225_v34 = vld [vmem:[%s1580_s7 + $0x48] sm:$0xff] }
  0xa6   :  { %960 = vmatmul.msk.f32.gmra.mxu1 %vm71_vm1, %v225_v34  ;;  %565 = vperm.xlu2 %997, %v495_v38   ;;  %v249_v50 = vld [vmem:[%s1581_s8 + $0x48] sm:$0xff] }
  0xa7   :  { %640 = vperm.xlu1 %996, %v622_v42   ;;  %v434_v2 = vpop.f32.mrf.mxu1 }
  0xac   :  { %v110_v36 = vpop.f32.mrf.mxu2 }
  0xad   :  { %v153_v58 = vadd.f32 %v152_v55, %v110_v36  ;;  %v623_v36 = vld [vmem:[%s1584_s11 + $0x8] sm:$0xff]  ;;  %v250_v55 = vld [vmem:[%s1581_s8 + $0x50] sm:$0xff] }
  0xae   :  { %645 = vperm.xlu0 %995, %v623_v36   ;;  %675 = vperm.xlu2 %997, %v629_v43  }
  0xaf   :  { %710 = vperm.xlu1 %996, %v636_v48  }
  0xb4   :  { %v196_v39 = vpop.f32.mrf.mxu2 }
  0xb5   :  { %v208_v3 = vadd.f32 %v196_v39, %v144_v0  ;;  %v226_v39 = vld [vmem:[%s1580_s7 + $0x50] sm:$0xff] }
  0xb6   :  { %961 = vmatmul.msk.f32.gmra.mxu1 %vm71_vm1, %v226_v39  ;;  %715 = vperm.xlu0 %995, %v637_v41   ;;  %v254_v0 = vld [vmem:[%s1581_s8 + $0x70] sm:$0xff] }
  0xb7   :  { %695 = vperm.xlu2 %997, %v633_v49  }
  0xbc   :  { %v199_v46 = vpop.f32.mrf.mxu2 }
  0xbd   :  { %v209_v1 = vadd.f32 %v199_v46, %v147_v60  ;;  %v228_v46 = vld [vmem:[%s1580_s7 + $0x60] sm:$0xff] }
  0xbe   :  { %962 = vmatmul.msk.f32.gmra.mxu1 %vm71_vm1, %v227_v44  ;;  %963 = vmatmul.msk.f32.vlgmr.msra.gmra.mxu2 %vm71_vm1, %v228_v46  ;;  %v630_v60 = vld [vmem:[%s1584_s11 + $0x40] sm:$0xff] }
  0xbf   :  { %685 = vperm.xlu0 %995, %v631_v47   ;;  %690 = vperm.xlu2 %997, %v632_v54  }
  0xc4   :  { %v202_v53 = vpop.f32.mrf.mxu2 }
  0xc5   :  { %v210_v61 = vadd.f32 %v202_v53, %v150_v57  ;;  %v634_v53 = vld [vmem:[%s1584_s11 + $0x60] sm:$0xff] }
  0xc6   :  { %964 = vmatmul.msk.f32.gmra.mxu2 %vm71_vm1, %v229_v51  ;;  %700 = vperm.xlu1 %996, %v634_v53   ;;  %v626_v57 = vld [vmem:[%s1584_s11 + $0x20] sm:$0xff]  ;;  %v576_v53 = vpop.permute.xlu2 %575 }
  0xc7   :  { %705 = vperm.xlu0 %995, %v635_v52   ;;  %660 = vperm.xlu2 %997, %v626_v57  }
  0xcc   :  { %v205_v59 = vpop.f32.mrf.mxu2 }
  0xcd   :  { %v211_v62 = vadd.f32 %v205_v59, %v153_v58  ;;  %v251_v58 = vld [vmem:[%s1581_s8 + $0x58] sm:$0xff] }
  0xce   :  { %965 = vmatmul.msk.f32.gmra.mxu2 %vm71_vm1, %v230_v56  ;;  %v231_v59 = vld [vmem:[%s1580_s7 + $0x78] sm:$0xff] }
  0xcf   :  { %998 = vtanh.f32 %v211_v62  ;;  %680 = vperm.xlu2 %997, %v630_v60   ;;  %v253_v62 = vld [vmem:[%s1581_s8 + $0x68] sm:$0xff] }
  0xd0   :  { %1000 = vtanh.f32 %v210_v61  ;;  %v252_v61 = vld [vmem:[%s1581_s8 + $0x60] sm:$0xff] }
  0xd1   :  { %1002 = vtanh.f32 %v209_v1  ;;  %v255_v1 = vld [vmem:[%s1581_s8 + $0x78] sm:$0xff] }
  0xd2   :  { %1004 = vtanh.f32 %v208_v3  ;;  %v437_v3 = vpop.f32.mrf.mxu1 }
  0xd5   :  { %v999_v4 = vpop.eup %998 }
  0xd6   :  { %316 = vmatpush.msra.mxu3 %v999_v4  ;;  %v1001_v6 = vpop.eup %1000  ;;  %966 = vmatmul.msk.f32.gmra.mxu2 %vm71_vm1, %v231_v59 }
  0xd7   :  { %v1003_v8 = vpop.eup %1002  ;;  %894 = vperm.xlu2 %997, %v891_v63  }
  0xd8   :  { %317 = vmatpush.msra.mxu3 %v1001_v6  ;;  %v1005_v10 = vpop.eup %1004 }
  0xda   :  { %318 = vmatpush.msra.mxu3 %v1003_v8  ;;  %v440_v8 = vpop.f32.mrf.mxu1 }
  0xdc   :  { %319 = vmatpush.msra.mxu3 %v1005_v10 }
  0xdd   :  { %935 = vmatmul.msk.f32.vlgmr.msra.gmra.mxu3 %vm113_vm0, %v240_v9 }
  0xe2   :  { %v443_v14 = vpop.f32.mrf.mxu1 }
  0xe5   :  { %936 = vmatmul.msk.f32.gmra.mxu3 %vm113_vm0, %v241_v13 }
  0xea   :  { %v446_v19 = vpop.f32.mrf.mxu1 }
  0xed   :  { %937 = vmatmul.msk.f32.gmra.mxu3 %vm113_vm0, %v242_v17  ;;  %v551_v17 = vpop.permute.xlu1 %550 }
  0xf2   :  { %v449_v27 = vpop.f32.mrf.mxu1 }
  0xf5   :  { %938 = vmatmul.msk.f32.gmra.mxu3 %vm113_vm0, %v243_v21  ;;  %v501_v21 = vpop.permute.xlu0 %500  ;;  %v521_v23 = vpop.permute.xlu1 %520 }
  0xf8   :  { %v546_v60 = vpop.permute.xlu2 %545 }
  0xfd   :  { %939 = vmatmul.msk.f32.gmra.mxu3 %vm113_vm0, %v244_v25 }
 0x105   :  { %940 = vmatmul.msk.f32.gmra.mxu3 %vm113_vm0, %v245_v30 }
 0x10d   :  { %941 = vmatmul.msk.f32.gmra.mxu3 %vm113_vm0, %v246_v35  ;;  %v452_v35 = vpop.f32.mrf.mxu1 }
 0x115   :  { %942 = vmatmul.msk.f32.gmra.mxu3 %vm113_vm0, %v247_v40  ;;  %v455_v43 = vpop.f32.mrf.mxu1 }
 0x11d   :  { %943 = vmatmul.msk.f32.gmra.mxu3 %vm113_vm0, %v248_v45  ;;  %v458_v46 = vpop.f32.mrf.mxu1 }
 0x125   :  { %944 = vmatmul.msk.f32.gmra.mxu3 %vm113_vm0, %v249_v50  ;;  %v461_v49 = vpop.f32.mrf.mxu1 }
 0x12d   :  { %945 = vmatmul.msk.f32.gmra.mxu3 %vm113_vm0, %v250_v55 }
 0x133   :  { %v464_v52 = vpop.f32.mrf.mxu1 }
 0x135   :  { %946 = vmatmul.msk.f32.gmra.mxu3 %vm113_vm0, %v251_v58 }
 0x13b   :  { %v467_v57 = vpop.f32.mrf.mxu1 }
 0x13d   :  { %947 = vmatmul.msk.f32.gmra.mxu3 %vm113_vm0, %v252_v61 }
 0x141   :  { %v470_v48 = vpop.f32.mrf.mxu2 }
 0x145   :  { %948 = vmatmul.msk.f32.gmra.mxu3 %vm113_vm0, %v253_v62  ;;  %v571_v62 = vpop.permute.xlu0 %570 }
 0x149   :  { %v473_v51 = vpop.f32.mrf.mxu2 }
 0x14d   :  { %949 = vmatmul.msk.f32.gmra.mxu3 %vm113_vm0, %v254_v0 }
 0x151   :  { %v476_v55 = vpop.f32.mrf.mxu2 }
 0x155   :  { %950 = vmatmul.msk.f32.gmra.mxu3 %vm113_vm0, %v255_v1 }
 0x160   :  { %v321_v4 = vpop.f32.mrf.mxu3 }
 0x161   :  { %v435_v6 = vadd.f32 %v434_v2, %v321_v4 }
 0x163   :  { %v1473_v25 = vadd.f32 %v501_v21, %v435_v6  ;;  %v541_v21 = vpop.permute.xlu1 %540 }
 0x168   :  { %v324_v9 = vpop.f32.mrf.mxu3 }
 0x169   :  { %v438_v10 = vadd.f32 %v437_v3, %v324_v9  ;;  %v479_v3 = vpop.f32.mrf.mxu2 }
 0x16b   :  { %v579_v32 = vadd.f32 %v506_v29, %v438_v10 }
 0x170   :  { %v327_v13 = vpop.f32.mrf.mxu3 }
 0x171   :  { %v441_v15 = vadd.f32 %v440_v8, %v327_v13 }
 0x173   :  { %v580_v38 = vadd.f32 %v511_v7, %v441_v15 }
 0x178   :  { %v330_v18 = vpop.f32.mrf.mxu3 }
 0x179   :  { %v444_v59 = vadd.f32 %v443_v14, %v330_v18 }
 0x17b   :  { %v581_v1 = vadd.f32 %v516_v5, %v444_v59 }
 0x180   :  { %v333_v22 = vpop.f32.mrf.mxu3 }
 0x181   :  { %v447_v24 = vadd.f32 %v446_v19, %v333_v22  ;;  %v566_v22 = vpop.permute.xlu2 %565 }
 0x183   :  { %v1475_v26 = vadd.f32 %v521_v23, %v447_v24 }
 0x185   :  { %v594_v28 = vmax.f32 %v1473_v25, %v1475_v26  ;;  %v608_v25 = vld [vmem:[%s1583_s10 + $0x10] sm:$0xff]  ;;  %v609_v26 = vld [vmem:[%s1583_s10 + $0x18] sm:$0xff] }
 0x188   :  { %v336_v30 = vpop.f32.mrf.mxu3 }
 0x189   :  { %v450_v31 = vadd.f32 %v449_v27, %v336_v30 }
 0x18b   :  { %v583_v33 = vadd.f32 %v526_v16, %v450_v31 }
 0x18d   :  { %v595_v34 = vmax.f32 %v579_v32, %v583_v33  ;;  %v606_v33 = vld [vmem:[%s1583_s10] sm:$0xff] }
 0x190   :  { %v339_v36 = vpop.f32.mrf.mxu3 }
 0x191   :  { %v453_v37 = vadd.f32 %v452_v35, %v339_v36  ;;  %v611_v35 = vld [vmem:[%s1583_s10 + $0x28] sm:$0xff]  ;;  %v612_v36 = vld [vmem:[%s1583_s10 + $0x30] sm:$0xff] }
 0x193   :  { %v584_v39 = vadd.f32 %v531_v12, %v453_v37  ;;  %v613_v37 = vld [vmem:[%s1583_s10 + $0x38] sm:$0xff] }
 0x195   :  { %v596_v40 = vmax.f32 %v580_v38, %v584_v39  ;;  %v614_v38 = vld [vmem:[%s1583_s10 + $0x40] sm:$0xff]  ;;  %v615_v39 = vld [vmem:[%s1583_s10 + $0x48] sm:$0xff] }
 0x198   :  { %v342_v41 = vpop.f32.mrf.mxu3 }
 0x199   :  { %v456_v56 = vadd.f32 %v455_v43, %v342_v41  ;;  %v617_v41 = vld [vmem:[%s1583_s10 + $0x58] sm:$0xff]  ;;  %v619_v43 = vld [vmem:[%s1583_s10 + $0x68] sm:$0xff] }
 0x19b   :  { %v585_v63 = vadd.f32 %v536_v11, %v456_v56 }
 0x19d   :  { %v597_v7 = vmax.f32 %v581_v1, %v585_v63 }
 0x1a0   :  { %v345_v42 = vpop.f32.mrf.mxu3 }
 0x1a1   :  { %v459_v9 = vadd.f32 %v458_v46, %v345_v42  ;;  %v618_v42 = vld [vmem:[%s1583_s10 + $0x60] sm:$0xff] }
 0x1a3   :  { %v586_v11 = vadd.f32 %v541_v21, %v459_v9 }
 0x1a5   :  { %v598_v31 = vmax.f32 %v594_v28, %v586_v11  ;;  %v610_v28 = vld [vmem:[%s1583_s10 + $0x20] sm:$0xff] }
 0x1a8   :  { %v348_v44 = vpop.f32.mrf.mxu3 }
 0x1a9   :  { %v462_v2 = vadd.f32 %v461_v49, %v348_v44  ;;  %v620_v44 = vld [vmem:[%s1583_s10 + $0x70] sm:$0xff] }
 0x1ab   :  { %v587_v15 = vadd.f32 %v546_v60, %v462_v2 }
 0x1b0   :  { %v351_v45 = vpop.f32.mrf.mxu3 }
 0x1b1   :  { %v465_v0 = vadd.f32 %v464_v52, %v351_v45  ;;  %v621_v45 = vld [vmem:[%s1583_s10 + $0x78] sm:$0xff] }
 0x1b3   :  { %v588_v10 = vadd.f32 %v551_v17, %v465_v0  ;;  %v599_v17 = vmax.f32 %v595_v34, %v587_v15  ;;  %v607_v34 = vld [vmem:[%s1583_s10 + $0x8] sm:$0xff] }
 0x1b5   :  { %v600_v24 = vmax.f32 %v596_v40, %v588_v10  ;;  %v616_v40 = vld [vmem:[%s1583_s10 + $0x50] sm:$0xff] }
 0x1b8   :  { %v354_v47 = vpop.f32.mrf.mxu3 }
 0x1b9   :  { %v468_v61 = vadd.f32 %v467_v57, %v354_v47  ;;  %v656_v47 = vpop.permute.xlu1 %655 }
 0x1bb   :  { %v589_v4 = vadd.f32 %v556_v20, %v468_v61  ;;  %v561_v20 = vpop.permute.xlu0 %560 }
 0x1bd   :  { %v601_v18 = vmax.f32 %v597_v7, %v589_v4 }
 0x1c0   :  { %v357_v50 = vpop.f32.mrf.mxu3 }
 0x1c1   :  { %v471_v16 = vadd.f32 %v470_v48, %v357_v50  ;;  %v676_v48 = vpop.permute.xlu2 %675  ;;  %v671_v50 = vpop.permute.xlu1 %670 }
 0x1c3   :  { %v590_v27 = vadd.f32 %v561_v20, %v471_v16  ;;  %v651_v56 = vpop.permute.xlu0 %650 }
 0x1c5   :  { %v1491_v32 = vmax.f32 %v598_v31, %v590_v27 }
 0x1c8   :  { %v360_v54 = vpop.f32.mrf.mxu3 }
 0x1c9   :  { %v474_v12 = vadd.f32 %v473_v51, %v360_v54  ;;  %v696_v51 = vpop.permute.xlu2 %695 }
 0x1cb   :  { %v591_v23 = vadd.f32 %v566_v22, %v474_v12  ;;  %v646_v63 = vpop.permute.xlu0 %645 }
 0x1cd   :  { %v1485_v30 = vmax.f32 %v599_v17, %v591_v23 }
 0x1d0   :  { %v363_v58 = vpop.f32.mrf.mxu3 }
 0x1d1   :  { %v477_v6 = vadd.f32 %v476_v55, %v363_v58  ;;  %v691_v54 = vpop.permute.xlu2 %690 }
 0x1d3   :  { %v592_v19 = vadd.f32 %v571_v62, %v477_v6 }
 0x1d5   :  { %v1482_v29 = vmax.f32 %v600_v24, %v592_v19  ;;  %v716_v19 = vpop.permute.xlu0 %715 }
 0x1d8   :  { %v366_v8 = vpop.f32.mrf.mxu3 }
 0x1d9   :  { %v480_v13 = vadd.f32 %v479_v3, %v366_v8  ;;  %v661_v58 = vpop.permute.xlu2 %660 }
 0x1db   :  { %v593_v14 = vadd.f32 %v576_v53, %v480_v13  ;;  %v666_v53 = vpop.permute.xlu1 %665 }
 0x1dd   :  { %v1479_v5 = vmax.f32 %v601_v18, %v593_v14  ;;  %v686_v18 = vpop.permute.xlu0 %685 }
 0x1df   :  { %778 = vmatpush.msra.mxu0 %v1479_v5 }
 0x1e1   :  { %779 = vmatpush.msra.mxu0 %v1482_v29 }
 0x1e3   :  { %780 = vmatpush.msra.mxu0 %v1485_v30  ;;  %v641_v57 = vpop.permute.xlu1 %640 }
 0x1e5   :  { %781 = vmatpush.msra.mxu0 %v1491_v32 }
 0x1e6   :  { %967 = vmatmul.msk.f32.vlgmr.msra.gmra.mxu0 %vm113_vm0, %v606_v33 }
 0x1eb   :  { %v711_v22 = vpop.permute.xlu1 %710 }
 0x1ee   :  { %968 = vmatmul.msk.f32.gmra.mxu0 %vm113_vm0, %v607_v34 }
 0x1f6   :  { %969 = vmatmul.msk.f32.gmra.mxu0 %vm113_vm0, %v608_v25 }
 0x1fe   :  { %970 = vmatmul.msk.f32.gmra.mxu0 %vm113_vm0, %v609_v26  ;;  %v681_v26 = vpop.permute.xlu2 %680 }
 0x206   :  { %971 = vmatmul.msk.f32.gmra.mxu0 %vm113_vm0, %v610_v28  ;;  %v706_v28 = vpop.permute.xlu0 %705 }
 0x20e   :  { %972 = vmatmul.msk.f32.gmra.mxu0 %vm113_vm0, %v611_v35 }
 0x216   :  { %973 = vmatmul.msk.f32.gmra.mxu0 %vm113_vm0, %v612_v36 }
 0x21e   :  { %974 = vmatmul.msk.f32.gmra.mxu0 %vm113_vm0, %v613_v37 }
 0x226   :  { %975 = vmatmul.msk.f32.gmra.mxu0 %vm113_vm0, %v614_v38 }
 0x22e   :  { %976 = vmatmul.msk.f32.gmra.mxu0 %vm113_vm0, %v615_v39  ;;  %v701_v39 = vpop.permute.xlu1 %700 }
 0x236   :  { %977 = vmatmul.msk.f32.gmra.mxu0 %vm113_vm0, %v616_v40 }
 0x23e   :  { %978 = vmatmul.msk.f32.gmra.mxu0 %vm113_vm0, %v617_v41 }
 0x246   :  { %979 = vmatmul.msk.f32.gmra.mxu0 %vm113_vm0, %v618_v42 }
 0x24e   :  { %980 = vmatmul.msk.f32.gmra.mxu0 %vm113_vm0, %v619_v43 }
 0x256   :  { %981 = vmatmul.msk.f32.gmra.mxu0 %vm113_vm0, %v620_v44 }
 0x25e   :  { %982 = vmatmul.msk.f32.gmra.mxu0 %vm113_vm0, %v621_v45 }
 0x263   :  { %v783_v46 = vpop.f32.mrf.mxu0 }
 0x264   :  { %v784_v60 = vadd.f32 %v783_v46, %v641_v57  ;;  %v844_v46 = vld [vmem:[%s1586_s13] sm:$0xf]  ;;  %s1033_s13 = smov [#allocation2]  }
 0x265   :  { %s912_s26 = sshll.u32 %s1033_s13, 4  ;;  %s913_s26 = int_to_ptr.vmem [resolvable:$true] %s912_s26 }
 0x26b   :  { %v786_v49 = vpop.f32.mrf.mxu0 }
 0x26c   :  { %v787_v1 = vadd.f32 %v786_v49, %v646_v63 }
 0x273   :  { %v789_v52 = vpop.f32.mrf.mxu0 }
 0x274   :  { %v790_v6 = vadd.f32 %v789_v52, %v651_v56 }
 0x27b   :  { %v792_v55 = vpop.f32.mrf.mxu0 }
 0x27c   :  { %v793_v23 = vadd.f32 %v792_v55, %v656_v47  ;;  %v843_v47 = vld [vmem:[%s1585_s12] sm:$0xf]  ;;  %s914_s12 = sshll.u32 %s1588_s15, 4  ;;  %s915_s12 = int_to_ptr.hbm [resolvable:$true] %s914_s12 }
 0x283   :  { %v795_v59 = vpop.f32.mrf.mxu0 }
 0x284   :  { %v796_v61 = vadd.f32 %v795_v59, %v661_v58 }
 0x286   :  { %v831_v62 = vmax.f32 %v784_v60, %v796_v61 }
 0x28b   :  { %v798_v0 = vpop.f32.mrf.mxu0 }
 0x28c   :  { %v799_v2 = vadd.f32 %v798_v0, %v666_v53 }
 0x28e   :  { %v832_v3 = vmax.f32 %v787_v1, %v799_v2 }
 0x293   :  { %v801_v4 = vpop.f32.mrf.mxu0 }
 0x294   :  { %v802_v7 = vadd.f32 %v801_v4, %v671_v50 }
 0x296   :  { %v833_v8 = vmax.f32 %v790_v6, %v802_v7 }
 0x29b   :  { %v804_v9 = vpop.f32.mrf.mxu0 }
 0x29c   :  { %v805_v11 = vadd.f32 %v804_v9, %v676_v48 }
 0x29e   :  { %v834_v20 = vmax.f32 %v793_v23, %v805_v11 }
 0x2a3   :  { %v807_v10 = vpop.f32.mrf.mxu0 }
 0x2a4   :  { %v808_v35 = vadd.f32 %v807_v10, %v681_v26 }
 0x2a6   :  { %v835_v43 = vmax.f32 %v831_v62, %v808_v35 }
 0x2ab   :  { %v810_v12 = vpop.f32.mrf.mxu0 }
 0x2ac   :  { %v811_v31 = vadd.f32 %v810_v12, %v686_v18 }
 0x2ae   :  { %v836_v40 = vmax.f32 %v832_v3, %v811_v31 }
 0x2b3   :  { %v813_v13 = vpop.f32.mrf.mxu0 }
 0x2b4   :  { %v814_v27 = vadd.f32 %v813_v13, %v691_v54 }
 0x2b6   :  { %v837_v36 = vmax.f32 %v833_v8, %v814_v27 }
 0x2bb   :  { %v816_v15 = vpop.f32.mrf.mxu0 }
 0x2bc   :  { %v817_v24 = vadd.f32 %v816_v15, %v696_v51  ;;  %v895_v51 = vpop.permute.xlu2 %894 }
 0x2be   :  { %v838_v33 = vmax.f32 %v834_v20, %v817_v24 }
 0x2c3   :  { %v819_v16 = vpop.f32.mrf.mxu0 }
 0x2c4   :  { %v820_v41 = vadd.f32 %v819_v16, %v701_v39 }
 0x2c6   :  { %v839_v45 = vmax.f32 %v835_v43, %v820_v41 }
 0x2cb   :  { %v822_v14 = vpop.f32.mrf.mxu0 }
 0x2cc   :  { %v823_v37 = vadd.f32 %v822_v14, %v706_v28 }
 0x2ce   :  { %v840_v44 = vmax.f32 %v836_v40, %v823_v37 }
 0x2d3   :  { %v825_v21 = vpop.f32.mrf.mxu0 }
 0x2d4   :  { %v826_v34 = vadd.f32 %v825_v21, %v711_v22 }
 0x2d6   :  { %v841_v42 = vmax.f32 %v837_v36, %v826_v34 }
 0x2db   :  { %v828_v17 = vpop.f32.mrf.mxu0 }
 0x2dc   :  { %v829_v25 = vadd.f32 %v828_v17, %v716_v19 }
 0x2de   :  { %v842_v38 = vmax.f32 %v838_v33, %v829_v25 }
 0x2e0   :  { %860 = vmatpush.msrb.mxu2 %v842_v38 }
 0x2e2   :  { %861 = vmatpush.msrb.mxu2 %v841_v42 }
 0x2e4   :  { %862 = vmatpush.msrb.mxu2 %v840_v44 }
 0x2e6   :  { %863 = vmatpush.msrb.mxu2 %v839_v45 }
 0x2e7   :  { %983 = vmatmul.msk.f32.vlgmr.msrb.gmra.mxu2 %vm113_vm0, %v844_v46 }
 0x2e8   :  { %883 = vmatpush.msra.mxu2 %v1479_v5 }
 0x2ea   :  { %884 = vmatpush.msra.mxu2 %v1482_v29 }
 0x2ec   :  { %885 = vmatpush.msra.mxu2 %v1485_v30 }
 0x2ee   :  { %886 = vmatpush.msra.mxu2 %v1491_v32 }
 0x2ef   :  { %984 = vmatmul.msk.f32.vlgmr.msra.gmra.mxu2 %vm113_vm0, %v843_v47 }
 0x36a   :  { %v865_v48 = vpop.f32.mrf.mxu2 }
 0x372   :  { %v888_v49 = vpop.f32.mrf.mxu2 }
 0x373   :  { %v889_v50 = vadd.f32 %v888_v49, %v865_v48 }
 0x375   :  { %v897_v52 = vadd.f32 %v895_v51, %v889_v50 }
 0x377   :  { %v899_v53 = vsel %vm898_vm2, %v897_v52, -inf }
 0x378   :  { %v900_v5 = vrot.slane %v899_v53, 4 }
 0x37a   :  { %v901_v54 = vmax.f32 %v899_v53, %v900_v5 }
 0x37c   :  { %v902_v29 = vrot.slane %v901_v54, 2 }
 0x37e   :  { %v903_v55 = vmax.f32 %v901_v54, %v902_v29 }
 0x380   :  { %v904_v30 = vrot.slane %v903_v55, 1 }
 0x382   :  { %v905_v32 = vmax.f32 %v903_v55, %v904_v30 }
 0x384   :  { %906 = vst [vmem:[#allocation2] sm:$0x1] %v905_v32 }
 0x385   :  { %917 = dma.vmem_to_hbm [thread:$0]  %s913_s26, 16, %s915_s12, [#allocation3]  }
 0x386   :  { %1030 = dma.done.wait [#allocation3], 16  }
 0x387   :  { %1031 = vsyncadd [#allocation3], 4294967280 }
 0x388   :  { %922 = vsyncpa [#allocation3], 1 }

</bundles_post_ra>
